<compile_context>
chip_gen: v7x
topology: tpu7x:2x2x1
jax: 0.10.0
libtpu: 0.0.40
codegen_flags: <defaults>
</compile_context>

<pallas_src>
import functools

import jax
import jax.numpy as jnp
from jax.experimental import pallas as pl
from jax.experimental.pallas import tpu as pltpu

NEG_SLOPE = 0.2                    # GATv2Conv default / GNNStack.negative_slope
HEADS = 4                          # GNNStack.heads
LN_EPS = 1e-5                      # nn.LayerNorm default eps
EDGE_DENSE_DTYPE = jnp.bfloat16    # jnp.float32 for bit-exact f32 semantics


# ----------------------------------------------------------------------------
# Tiling helpers
# ----------------------------------------------------------------------------
def _row_tile(m, cap=512):
    """Largest row tile <= cap that divides m and is a multiple of 8 (or m)."""
    if m <= cap:
        return m
    for t in (512, 256, 128, 64, 32, 16, 8):
        if m % t == 0:
            return t
    return m


def _dst_tile(n_dst, n_src, f_out, itemsize, budget_bytes=8 * 1024 * 1024):
    """Destination-row tile for the attention kernel.

    Keeps the double-buffered e_dense tile (2 * T * N_src * F * itemsize)
    under `budget_bytes`, so the pipeline stays within the scoped-VMEM default
    on all of v5e / v6e / v7x (v7x only has 64 MiB physical VMEM)."""
    if n_dst <= 128:
        return n_dst
    chosen = n_dst
    for t in (256, 128, 64, 32, 16, 8):
        if n_dst % t == 0:
            chosen = t
            if 2 * t * n_src * f_out * itemsize <= budget_bytes:
                return t
    return chosen


# ----------------------------------------------------------------------------
# Linear (used for the fused lin_l|lin_r projection and the fused lin_edge)
# ----------------------------------------------------------------------------
def _linear_kernel(x_ref, w_ref, b_ref, o_ref, *, relu):
    y = jnp.dot(x_ref[...], w_ref[...], preferred_element_type=jnp.float32)
    y = y + b_ref[...]
    if relu:
        y = jnp.maximum(y, 0.0)
    o_ref[...] = y.astype(o_ref.dtype)


def linear(x, w_t, b, relu=False):
    # x: [M, K], w_t: [K, N] (pre-transposed weight), b: [1, N]
    m, k = x.shape
    n = w_t.shape[1]
    t = _row_tile(m)
    return pl.pallas_call(
        functools.partial(_linear_kernel, relu=relu),
        out_shape=jax.ShapeDtypeStruct((m, n), jnp.float32),
        grid=(m // t,),
        in_specs=[
            pl.BlockSpec((t, k), lambda i: (i, 0)),
            pl.BlockSpec((k, n), lambda i: (0, 0)),
            pl.BlockSpec((1, n), lambda i: (0, 0)),
        ],
        out_specs=pl.BlockSpec((t, n), lambda i: (i, 0)),
        compiler_params=pltpu.CompilerParams(dimension_semantics=("parallel",)),
    )(x, w_t, b)


# ----------------------------------------------------------------------------
# GATv2 attention: head-vectorized, tiled over dst rows, fused ReLU(+LN) tail
# ----------------------------------------------------------------------------
def _gatv2_attn_kernel(xl_ref, xr_ref, e_ref, mask_ref, attbd_ref, expand_ref,
                       bias_ref, gamma_ref, beta_ref, emb_ref, x_ref,
                       *, apply_ln):
    t, n, f = e_ref.shape
    h = attbd_ref.shape[1]

    xl = xl_ref[...]                              # [N, F]  (all source rows)
    xr = xr_ref[...]                              # [T, F]  (dst tile)
    e = e_ref[...].astype(jnp.float32)            # [T, N, F]
    mask = mask_ref[...]                          # [T, N, 1]

    # GATv2 score: leaky_relu(x_l[src] + x_r[dst] + lin_edge(edge_attr))
    s = xl[None, :, :] + xr[:, None, :] + e                       # [T, N, F]
    s = jnp.where(s >= 0.0, s, NEG_SLOPE * s)

    # Per-head logits via ONE MXU matmul against a block-diagonal att matrix.
    logits = jnp.dot(s.reshape(t * n, f), attbd_ref[...],
                     preferred_element_type=jnp.float32).reshape(t, n, h)
    logits = jnp.where(mask > 0.0, logits, -1e30)

    # Masked softmax over source nodes, all heads at once.
    m = jnp.max(logits, axis=1, keepdims=True)                    # [T, 1, H]
    p = jnp.exp(logits - m) * mask                                # [T, N, H]
    denom = jnp.sum(p, axis=1, keepdims=True)                     # [T, 1, H]
    alpha = p * pl.reciprocal(denom, approx=True)                 # [T, N, H]

    # Expand per-head alphas to feature width (one-hot [H, F] blocks) and
    # aggregate lane-dense: out[t, :] = sum_n alpha_full[t, n, :] * x_l[n, :].
    alpha_full = jnp.dot(alpha.reshape(t * n, h), expand_ref[...],
                         preferred_element_type=jnp.float32).reshape(t, n, f)
    out = jnp.sum(alpha_full * xl[None, :, :], axis=1) + bias_ref[...]  # [T, F]

    emb_ref[...] = out.astype(emb_ref.dtype)

    # Fused epilogue: ReLU (+ LayerNorm on non-final layers). Dropout == id.
    y = jnp.maximum(out, 0.0)
    if apply_ln:
        mu = jnp.mean(y, axis=-1, keepdims=True)
        yc = y - mu
        var = jnp.mean(yc * yc, axis=-1, keepdims=True)
        y = yc * jax.lax.rsqrt(var + LN_EPS) * gamma_ref[...] + beta_ref[...]
    x_ref[...] = y.astype(x_ref.dtype)


def gatv2_attention(xl, xr, e_dense, mask3, att_bd, expand, bias, gamma, beta,
                    apply_ln):
    n, f = xl.shape
    h = att_bd.shape[1]
    t = _dst_tile(n, n, f, e_dense.dtype.itemsize)
    kernel = functools.partial(_gatv2_attn_kernel, apply_ln=apply_ln)
    out_shape = (jax.ShapeDtypeStruct((n, f), jnp.float32),   # emb (pre-ReLU)
                 jax.ShapeDtypeStruct((n, f), jnp.float32))   # x (post epilogue)
    emb, x_out = pl.pallas_call(
        kernel,
        out_shape=out_shape,
        grid=(n // t,),
        in_specs=[
            pl.BlockSpec((n, f), lambda i: (0, 0)),        # x_l (all sources)
            pl.BlockSpec((t, f), lambda i: (i, 0)),        # x_r (dst tile)
            pl.BlockSpec((t, n, f), lambda i: (i, 0, 0)),  # dense edge embeddings
            pl.BlockSpec((t, n, 1), lambda i: (i, 0, 0)),  # adjacency mask
            pl.BlockSpec((f, h), lambda i: (0, 0)),        # block-diagonal att
            pl.BlockSpec((h, f), lambda i: (0, 0)),        # head->feature expand
            pl.BlockSpec((1, f), lambda i: (0, 0)),        # bias
            pl.BlockSpec((1, f), lambda i: (0, 0)),        # LN gamma
            pl.BlockSpec((1, f), lambda i: (0, 0)),        # LN beta
        ],
        out_specs=(pl.BlockSpec((t, f), lambda i: (i, 0)),
                   pl.BlockSpec((t, f), lambda i: (i, 0))),
        compiler_params=pltpu.CompilerParams(dimension_semantics=("parallel",)),
    )(xl, xr, e_dense, mask3, att_bd, expand, bias, gamma, beta)
    return emb, x_out


# ----------------------------------------------------------------------------
# Fused head: global_max_pool + post_mp MLP + log_softmax in one kernel
# ----------------------------------------------------------------------------
def _head_kernel(x_ref, mem_ref, w1_ref, b1_ref, w2_ref, b2_ref, w3_ref, b3_ref,
                 o_ref):
    x = x_ref[...]                                                 # [N, F]
    mem = mem_ref[...]                                             # [G, N, 1]
    # global_max_pool, all graphs in one vectorized pass
    masked = jnp.where(mem > 0.0, x[None, :, :], -3.0e38)          # [G, N, F]
    pooled = jnp.max(masked, axis=1)                               # [G, F]
    # post_mp: Linear -> (Dropout) -> ReLU -> Linear -> (Dropout) -> ReLU -> Linear
    hcur = jnp.dot(pooled, w1_ref[...], preferred_element_type=jnp.float32) + b1_ref[...]
    hcur = jnp.maximum(hcur, 0.0)
    hcur = jnp.dot(hcur, w2_ref[...], preferred_element_type=jnp.float32) + b2_ref[...]
    hcur = jnp.maximum(hcur, 0.0)
    logits = jnp.dot(hcur, w3_ref[...], preferred_element_type=jnp.float32) + b3_ref[...]
    # log_softmax
    mx = jnp.max(logits, axis=-1, keepdims=True)
    z = logits - mx
    lse = jnp.log(jnp.sum(jnp.exp(z), axis=-1, keepdims=True))
    o_ref[...] = (z - lse).astype(o_ref.dtype)


def pooled_head(x, memT3, params):
    g = memT3.shape[0]
    out_dim = params["mp_w3_t"].shape[1]
    args = (x, memT3, params["mp_w1_t"], params["mp_b1"], params["mp_w2_t"],
            params["mp_b2"], params["mp_w3_t"], params["mp_b3"])
    return pl.pallas_call(
        _head_kernel,
        out_shape=jax.ShapeDtypeStruct((g, out_dim), jnp.float32),
        grid=(1,),
        in_specs=[pl.BlockSpec(a.shape, lambda i, _nd=a.ndim: (0,) * _nd)
                  for a in args],
        out_specs=pl.BlockSpec((g, out_dim), lambda i: (0, 0)),
        compiler_params=pltpu.CompilerParams(dimension_semantics=("arbitrary",)),
    )(*args)


# ----------------------------------------------------------------------------
# Full GNNStack forward
# ----------------------------------------------------------------------------
def gnn_stack_forward(params, x, edge_index, edge_attr, batch, num_graphs):
    n = x.shape[0]
    f_out = params["conv0"]["att_bd"].shape[0]

    # ---- graph-structure glue (hoisted: shared by both conv layers) --------
    src, dst = edge_index[0], edge_index[1]
    ones = jnp.ones((src.shape[0],), jnp.float32)
    deg = jax.ops.segment_sum(ones, dst, num_segments=n)
    attr_sum = jax.ops.segment_sum(edge_attr, dst, num_segments=n)
    # add_self_loops(fill_value='mean'): self-loop attr = mean of incoming attrs
    loop_attr = attr_sum / jnp.maximum(deg, 1.0)[:, None]
    loop_idx = jnp.arange(n, dtype=src.dtype)
    src_f = jnp.concatenate([src, loop_idx])
    dst_f = jnp.concatenate([dst, loop_idx])
    attr_f = jnp.concatenate([edge_attr, loop_attr], axis=0)

    mask = jnp.zeros((n, n), jnp.float32).at[dst_f, src_f].set(1.0)
    mask3 = mask[:, :, None]                                        # [N, N, 1]

    # lin_edge for BOTH conv layers in a single fused matmul (shared edge_attr)
    we_both = jnp.concatenate([params["conv0"]["we_t"], params["conv1"]["we_t"]],
                              axis=1)
    e_emb = linear(attr_f, we_both, jnp.zeros((1, 2 * f_out), jnp.float32))
    # sparse edge list -> dense [N, N, F] edge embeddings (bf16 halves HBM).
    # TODO(synk): for large/sparse graphs replace this O(N^2*F) materialization
    #             with a CSR + PrefetchScalarGridSpec gather kernel.
    # TODO(synk): duplicate (multi-)edges collapse in this dense form.
    e0 = e_emb[:, :f_out].astype(EDGE_DENSE_DTYPE)
    e1 = e_emb[:, f_out:].astype(EDGE_DENSE_DTYPE)
    e_dense0 = jnp.zeros((n, n, f_out), EDGE_DENSE_DTYPE).at[dst_f, src_f].set(e0)
    e_dense1 = jnp.zeros((n, n, f_out), EDGE_DENSE_DTYPE).at[dst_f, src_f].set(e1)

    # ---- layer 0: GATv2 conv + ReLU + LayerNorm (fused epilogue) -----------
    p0 = params["conv0"]
    xlr = linear(x, p0["wlr_t"], p0["blr"])                 # fused lin_l | lin_r
    _, x = gatv2_attention(xlr[:, :f_out], xlr[:, f_out:], e_dense0, mask3,
                           p0["att_bd"], params["expand"], p0["bias"],
                           params["ln0_g"], params["ln0_b"], apply_ln=True)

    # ---- layer 1: GATv2 conv + ReLU (fused epilogue; no LN on last layer) --
    p1 = params["conv1"]
    xlr = linear(x, p1["wlr_t"], p1["blr"])
    emb, x = gatv2_attention(xlr[:, :f_out], xlr[:, f_out:], e_dense1, mask3,
                             p1["att_bd"], params["expand"], p1["bias"],
                             params["ln0_g"], params["ln0_b"], apply_ln=False)

    # ---- global_max_pool + MLP head + log_softmax (single fused kernel) ----
    memT3 = (jnp.arange(num_graphs)[:, None] == batch[None, :]
             ).astype(jnp.float32)[:, :, None]                      # [G, N, 1]
    logp = pooled_head(x, memT3, params)
    return emb, logp


# ----------------------------------------------------------------------------
# Deterministic parameter init
# ----------------------------------------------------------------------------
def _glorot(key, shape):
    fan_out, fan_in = shape
    lim = (6.0 / (fan_in + fan_out)) ** 0.5
    return jax.random.uniform(key, shape, jnp.float32, -lim, lim)


def init_conv_params(key, in_dim, hidden_dim, heads, edge_dim):
    c = hidden_dim
    f_out = heads * c
    ks = jax.random.split(key, 4)
    wl_t = _glorot(ks[0], (f_out, in_dim)).T                  # lin_l weight^T
    wr_t = _glorot(ks[1], (f_out, in_dim)).T                  # lin_r weight^T
    we_t = _glorot(ks[2], (f_out, edge_dim)).T                # lin_edge weight^T
    att = _glorot(ks[3], (heads, c))                          # att [H, C]
    # block-diagonal att: att_bd[h*C + c, h] = att[h, c]
    sel = jnp.kron(jnp.eye(heads, dtype=jnp.float32),
                   jnp.ones((c, 1), jnp.float32))             # [F, H]
    att_bd = att.reshape(f_out, 1) * sel
    return {
        "wlr_t": jnp.concatenate([wl_t, wr_t], axis=1),       # [in, 2F] fused
        "blr": jnp.zeros((1, 2 * f_out), jnp.float32),
        "we_t": we_t,                                         # [edge_dim, F]
        "att_bd": att_bd,                                     # [F, H]
        "bias": jnp.zeros((1, f_out), jnp.float32),
    }


def init_params(key, input_dim, hidden_dim, output_dim, edge_dim=3):
    f = HEADS * hidden_dim
    ks = jax.random.split(key, 8)
    return {
        "conv0": init_conv_params(ks[0], input_dim, hidden_dim, HEADS, edge_dim),
        "conv1": init_conv_params(ks[1], f, hidden_dim, HEADS, edge_dim),
        # expand[h, h*C + c] = 1 : maps per-head alphas to full feature width
        "expand": jnp.kron(jnp.eye(HEADS, dtype=jnp.float32),
                           jnp.ones((1, hidden_dim), jnp.float32)),   # [H, F]
        "ln0_g": jnp.ones((1, f), jnp.float32),
        "ln0_b": jnp.zeros((1, f), jnp.float32),
        "mp_w1_t": _glorot(ks[2], (hidden_dim, f)).T,
        "mp_b1": 0.01 * jax.random.normal(ks[3], (1, hidden_dim), jnp.float32),
        "mp_w2_t": _glorot(ks[4], (hidden_dim, hidden_dim)).T,
        "mp_b2": 0.01 * jax.random.normal(ks[5], (1, hidden_dim), jnp.float32),
        "mp_w3_t": _glorot(ks[6], (output_dim, hidden_dim)).T,
        "mp_b3": 0.01 * jax.random.normal(ks[7], (1, output_dim), jnp.float32),
    }


# ----------------------------------------------------------------------------
# Example run
# ----------------------------------------------------------------------------
if __name__ == "__main__":
    input_dim, hidden_dim, output_dim, edge_dim = 6, 8, 5, 3
    num_graphs = 2
    nodes_per_graph = 8
    N = num_graphs * nodes_per_graph

    key = jax.random.PRNGKey(0)
    k_x, k_e, k_p = jax.random.split(key, 3)

    # node features
    x = jax.random.normal(k_x, (N, input_dim), jnp.float32)

    # bidirectional ring inside each graph (no self loops, no duplicates)
    srcs, dsts = [], []
    for g in range(num_graphs):
        off = g * nodes_per_graph
        for i in range(nodes_per_graph):
            a = off + i
            b = off + (i + 1) % nodes_per_graph
            srcs += [a, b]
            dsts += [b, a]
    edge_index = jnp.array([srcs, dsts], dtype=jnp.int32)      # [2, E]
    E = edge_index.shape[1]
    edge_attr = jax.random.normal(k_e, (E, edge_dim), jnp.float32)
    batch = jnp.array([g for g in range(num_graphs) for _ in range(nodes_per_graph)],
                      dtype=jnp.int32)

    params = init_params(k_p, input_dim, hidden_dim, output_dim, edge_dim)

    emb, logp = gnn_stack_forward(params, x, edge_index, edge_attr, batch, num_graphs)
    emb = jax.block_until_ready(emb)
    logp = jax.block_until_ready(logp)

    assert emb.shape == (N, HEADS * hidden_dim)
    assert logp.shape == (num_graphs, output_dim)
    print("KERNEL_OK")
</pallas_src>

<mosaic_0001>
module attributes {stable_mosaic.version = 11 : i64} {
  func.func @_linear_kernel(%arg0: i32, %arg1: memref<48x3xf32, #tpu.memory_space<vmem>>, %arg2: memref<3x64xf32, #tpu.memory_space<vmem>>, %arg3: memref<1x64xf32, #tpu.memory_space<vmem>>, %arg4: memref<48x64xf32, #tpu.memory_space<vmem>>) attributes {dimension_semantics = [#tpu.dimension_semantics<parallel>], iteration_bounds = array<i64: 1>, scalar_prefetch = 0 : i64, scratch_operands = 0 : i64, tpu.core_type = #tpu.core_type<tc>, window_params = [{transform_indices = @transform_0, window_bounds = array<i64: 48, 3>}, {pipeline_mode = #tpu.pipeline_mode<synchronous>, transform_indices = @transform_1, window_bounds = array<i64: 3, 64>}, {pipeline_mode = #tpu.pipeline_mode<synchronous>, transform_indices = @transform_2, window_bounds = array<i64: 1, 64>}, {transform_indices = @transform_3, window_bounds = array<i64: 48, 64>}]} {
    %c0 = arith.constant 0 : index
    %c0_0 = arith.constant 0 : index
    %0 = vector.load %arg1[%c0, %c0_0] : memref<48x3xf32, #tpu.memory_space<vmem>>, vector<48x3xf32>
    %c0_1 = arith.constant 0 : index
    %c0_2 = arith.constant 0 : index
    %1 = vector.load %arg2[%c0_1, %c0_2] : memref<3x64xf32, #tpu.memory_space<vmem>>, vector<3x64xf32>
    %cst = arith.constant dense<0.000000e+00> : vector<48x64xf32>
    %2 = tpu.matmul %0, %1, %cst {dimension_numbers = #tpu.dot_dimension_numbers<[1], [0], [0], [1], [0, 0, 1, 1], [], []>} : vector<48x3xf32>, vector<3x64xf32>, vector<48x64xf32> -> vector<48x64xf32>
    %c0_3 = arith.constant 0 : index
    %c0_4 = arith.constant 0 : index
    %3 = vector.load %arg3[%c0_3, %c0_4] : memref<1x64xf32, #tpu.memory_space<vmem>>, vector<1x64xf32>
    %4 = vector.broadcast %3 : vector<1x64xf32> to vector<48x64xf32>
    %5 = arith.addf %2, %4 : vector<48x64xf32>
    %c0_5 = arith.constant 0 : index
    %c0_6 = arith.constant 0 : index
    %6 = vector.load %arg4[%c0_5, %c0_6] : memref<48x64xf32, #tpu.memory_space<vmem>>, vector<48x64xf32>
    tpu.vector_store %arg4[%c0_5, %c0_6], %5 {strides = array<i32>} : memref<48x64xf32, #tpu.memory_space<vmem>>, vector<48x64xf32>,
    return
  }
  func.func @transform_0(%arg0: i32) -> (i32, i32) {
    %c0_i32 = arith.constant 0 : i32
    %c0_i32_0 = arith.constant 0 : i32
    return %arg0, %c0_i32 : i32, i32
  }
  func.func @transform_1(%arg0: i32) -> (i32, i32) {
    %c0_i32 = arith.constant 0 : i32
    %c0_i32_0 = arith.constant 0 : i32
    %c0_i32_1 = arith.constant 0 : i32
    return %c0_i32, %c0_i32_0 : i32, i32
  }
  func.func @transform_2(%arg0: i32) -> (i32, i32) {
    %c0_i32 = arith.constant 0 : i32
    %c0_i32_0 = arith.constant 0 : i32
    %c0_i32_1 = arith.constant 0 : i32
    return %c0_i32, %c0_i32_0 : i32, i32
  }
  func.func @transform_3(%arg0: i32) -> (i32, i32) {
    %c0_i32 = arith.constant 0 : i32
    %c0_i32_0 = arith.constant 0 : i32
    return %arg0, %c0_i32 : i32, i32
  }
}

</mosaic_0001>

<bundles_post_ra>
// kernel: tpu_custom_call.1
= control target key start
LH: loop header
LB: loop body
LE: loop exit
PB: predicated region body
PF: predicated region fallthrough
CT: control target
= control target key end

     0   :  { %vm48_vm0 = vcmask 1042432   ;;  %vm29_vm1 = vcmask 23552   ;;  %s296_s0 = inlined_call_operand.vmem [shape: f32[48,3], index: 0, kind: input, shape index: {}]   ;;  %s297_s1 = inlined_call_operand.vmem [shape: f32[3,64], index: 1, kind: input, shape index: {}]   ;;  %s298_s2 = inlined_call_operand.vmem [shape: f32[1,64], index: 2, kind: input, shape index: {}]   ;;  %s299_s3 = inlined_call_operand.hbm [shape: f32[48,64], index: 3, kind: output, shape index: {}]  }
   0x1   :  { %v21_v0 = vld [vmem:[%s297_s1] sm:$0x7]  ;;  %v17_v1 = vld [vmem:[%s296_s0 + $0x10] sm:$0xff]  ;;  %v18_v2 = vld [vmem:[%s296_s0 + $0x18] sm:$0xff] }
   0x2   :  { %196 = vmatprep.subr.msk.mxu1 %vm48_vm0, %v21_v0  ;;  %190 = vmatprep.mubr.msk.f32.mxu1 %vm29_vm1, %v17_v1  ;;  %v15_v3 = vld [vmem:[%s296_s0] sm:$0xff]  ;;  %v16_v5 = vld [vmem:[%s296_s0 + $0x8] sm:$0xff] }
   0x3   :  { %v19_v4 = vld [vmem:[%s296_s0 + $0x20] sm:$0xff]  ;;  %197 = vmatpush3.msk.msra.mxu1 %vm48_vm0, %v21_v0  ;;  %185 = vmatprep.subr.msk.mxu0 %vm48_vm0, %v21_v0 }
   0x4   :  { %8 = vsyncpa [#allocation3], 0  ;;  %191 = vmatmul.mubr.msk.f32.vlgmr.msra.gmra.mrb[0].mxu1 %vm29_vm1, %v18_v2  ;;  %186 = vmatpush3.msk.msra.mxu0 %vm48_vm0, %v21_v0  ;;  %v20_v6 = vld [vmem:[%s296_s0 + $0x28] sm:$0xff]  ;;  %v170_v7 = vld [vmem:[%s298_s2] ss:$0 sm:$0xff]  ;;  %vm147_vm2 = vcmask 523264  }
   0x5   :  { %187 = vmatprep.mubr.msk.f32.mxu0 %vm29_vm1, %v15_v3  ;;  %193 = vmatprep.mubr.msk.f32.mxu1 %vm29_vm1, %v19_v4  ;;  %s225_s27 = smov [#allocation2]  }
   0x6   :  { %188 = vmatmul.mubr.msk.f32.vlgmr.msra.gmra.mrb[0].mxu0 %vm29_vm1, %v16_v5  ;;  %s159_s28 = sshll.u32 %s225_s27, 4  ;;  %s160_s28 = int_to_ptr.vmem [resolvable:$true] %s159_s28 }
   0x7   :  { %s201_s0 = scalar_lea.vmem %s160_s28, 768  ;;  %p206_p1 = scmp.lt.s32.totalorder %s160_s28, %s160_s28 }
   0x8   :  { %194 = vmatmul.mubr.msk.f32.gmra.mrb[2].mxu1 %vm29_vm1, %v20_v6  ;;  %p202_p0 = scmp.ne.s32.totalorder %s160_s28, %s201_s0  ;;  %p207_p2 = scmp.lt.s32.totalorder %s201_s0, %s201_s0 }
   0xa   :  { %p208_p3 = por %p207_p2, %p206_p1 }
   0xc   :  { %p209_p4 = pnand %p208_p3, %p202_p0 }
  0xd7   :  { %v192_v8 = vpop.f32.mrb[0].mxu1 }
  0xd8   :  { %v134_v9 = vadd.f32 %v192_v8, %v170_v7  ;;  %v128_v10 = vpop.f32.mrb[1].mxu1 }
  0xd9   :  { %v129_v11 = vadd.f32 %v170_v7, %v128_v10  ;;  %v189_v12 = vpop.f32.mrb[0].mxu0 }
  0xda   :  { %151 = vst.msk [vmem:[#allocation2 + $0x18] sm:$0xff] %vm147_vm2, %v134_v9  ;;  %v124_v13 = vadd.f32 %v189_v12, %v170_v7  ;;  %v118_v14 = vpop.f32.mrb[1].mxu0 }
  0xdb   :  { %150 = vst.msk [vmem:[#allocation2 + $0x10] sm:$0xff] %vm147_vm2, %v129_v11  ;;  %v119_v15 = vadd.f32 %v170_v7, %v118_v14  ;;  %v195_v16 = vpop.f32.mrb[2].mxu1 }
  0xdc   :  { %149 = vst.msk [vmem:[#allocation2 + $0x8] sm:$0xff] %vm147_vm2, %v124_v13  ;;  %v144_v17 = vadd.f32 %v195_v16, %v170_v7  ;;  %v138_v18 = vpop.f32.mrb[3].mxu1 }
  0xdd   :  { %148 = vst.msk [vmem:[#allocation2] sm:$0xff] %vm147_vm2, %v119_v15  ;;  %v139_v19 = vadd.f32 %v170_v7, %v138_v18 }
  0xde   :  { %153 = vst.msk [vmem:[#allocation2 + $0x28] sm:$0xff] %vm147_vm2, %v144_v17 }
  0xdf   :  { %152 = vst.msk [vmem:[#allocation2 + $0x20] sm:$0xff] %vm147_vm2, %v139_v19 }
  0xe0   :  { %212 = shalt.err (!%p209_p4)
}
  0xe1   :  { %s213_s30 = scalar_lea.hbm %s299_s3, 768 }
  0xe2   :  { %p214_p5 = scmp.ne.s32.totalorder %s299_s3, %s213_s30  ;;  %p217_p6 = scmp.lt.u32.totalorder %s213_s30, %s299_s3 }
  0xe4   :  { %p219_p7 = pnand %p217_p6, %p214_p5 }
  0xe6   :  { %222 = shalt.err (!%p219_p7)
}
  0xe7   :  { %s226_s8 = smov 128   ;;  %s227_s9 = smov 8  }
  0xe8   :  { %165 = dma.vmem_to_hbm [thread:$0]  %s160_s28, 768, %s299_s3, [#allocation3], %s226_s8, %s226_s8, %s227_s9  }
  0xe9   :  { %223 = dma.done.wait [#allocation3], 768  }
  0xea   :  { %224 = vsyncadd [#allocation3], 4294966528 }
  0xeb   :  { %169 = vsyncpa [#allocation3], 1 }

</bundles_post_ra>
